<compile_context>
chip_gen: v5e
topology: v5e:2x2
jax: 0.10.0
libtpu: 0.0.40
codegen_flags: <defaults>
</compile_context>

<pallas_src>
import numpy as np

import jax
import jax.numpy as jnp
from jax.experimental import pallas as pl
from jax.experimental.pallas import tpu as pltpu

# ---- fixed graph configuration (small shapes) ----
N, C_IN, H, W = 2, 4, 16, 16
C_MID = 8
NUM_CLASSES = 10
BN_EPS = 1e-5
HP, WP = H + 2, W + 2           # spatially zero-padded extents
LANES = W * C_MID               # 128 -> lane-dense activation layout (x, c_out)


# ---------------- Pallas kernels ----------------

def stage_a_kernel(x_ref, w_ref, b_ref, o_ref):
    """ReLU -> Conv3x3(C_IN->C_MID, pad=1) -> folded BN1 -> ReLU.

    x_ref: (N, HP, WP*C_IN)   zero-padded NHWC input, lanes = (w, c_in)
    w_ref: (3, WP*C_IN, LANES) block-Toeplitz folded conv1 weights (one block per kh)
    b_ref: (1, LANES)          folded bias tiled over x
    o_ref: (N*H, LANES)        lane-dense activation, rows=(n, y), lanes=(x, c_out)
    """
    acc = jnp.zeros((N * H, LANES), jnp.float32)
    for kh in range(3):  # statically unrolled; each GEMM: (32,72) x (72,128)
        lhs = jnp.maximum(x_ref[:, kh:kh + H, :], 0.0)   # layer-0 ReLU (zero pad is ReLU-invariant)
        lhs = lhs.reshape(N * H, WP * C_IN)
        acc = acc + jnp.dot(lhs, w_ref[kh], preferred_element_type=jnp.float32)
    acc = acc + b_ref[...]                               # conv bias + BN1 folded
    o_ref[...] = jnp.maximum(acc, 0.0)                   # ReLU


def stage_b_kernel(a1p_ref, a1_ref, w_ref, b_ref, pool_ref, sel_ref, fcw_ref, fcb_ref, o_ref):
    """Conv3x3(C_MID->C_MID)+folded BN2 -> StubAdd(skip)+ReLU -> GAP -> Linear -> LogSoftmax.

    a1p_ref: (N, HP, WP*C_MID) zero-padded stage-A activation
    a1_ref : (N*H, LANES)      unpadded stage-A activation (skip branch)
    w_ref  : (3, WP*C_MID, LANES) block-Toeplitz folded conv2 weights
    b_ref  : (1, LANES)
    pool_ref:(LANES, C_MID)    averages over x (scaled by 1/(H*W))
    sel_ref: (N, N*H)          sums the H rows belonging to each sample
    fcw_ref: (C_MID, NUM_CLASSES), fcb_ref: (1, NUM_CLASSES)
    o_ref  : (N, NUM_CLASSES)  log-probabilities
    """
    acc = jnp.zeros((N * H, LANES), jnp.float32)
    for kh in range(3):  # each GEMM: (32,144) x (144,128)
        lhs = a1p_ref[:, kh:kh + H, :].reshape(N * H, WP * C_MID)
        acc = acc + jnp.dot(lhs, w_ref[kh], preferred_element_type=jnp.float32)
    conv2 = acc + b_ref[...]                                   # BN2 folded into w/b
    r = jnp.maximum(a1_ref[...] + conv2, 0.0)                  # StubAdd + ReLU, lane dense

    # GlobalAvgPool2d: average over x (lanes) via pool matmul, then over y (rows) via sel matmul
    pooled = jnp.dot(r, pool_ref[...], preferred_element_type=jnp.float32)   # (N*H, C_MID)
    g = jnp.dot(sel_ref[...], pooled, preferred_element_type=jnp.float32)    # (N, C_MID)

    # Linear + LogSoftmax(dim=1)
    logits = jnp.dot(g, fcw_ref[...], preferred_element_type=jnp.float32) + fcb_ref[...]
    m = jnp.max(logits, axis=-1, keepdims=True)
    sh = logits - m
    lse = jnp.log(jnp.sum(jnp.exp(sh), axis=-1, keepdims=True))
    o_ref[...] = sh - lse


# ---------------- pallas_call glue ----------------

def _vmem_call(kernel, out_shape_dtype, *args):
    # Whole (small) arrays live in VMEM; grid=() -> single kernel invocation.
    return pl.pallas_call(
        kernel,
        out_shape=out_shape_dtype,
        in_specs=[pl.BlockSpec(memory_space=pltpu.MemorySpace.VMEM) for _ in args],
        out_specs=pl.BlockSpec(memory_space=pltpu.MemorySpace.VMEM),
    )(*args)


# ---------------- parameters (deterministic, synthetic, torch layouts) ----------------

def init_params(key):
    ks = jax.random.split(key, 16)
    p = {}
    p["conv1_w"] = 0.2 * jax.random.normal(ks[0], (C_MID, C_IN, 3, 3), jnp.float32)   # torch OIHW
    p["conv1_b"] = 0.1 * jax.random.normal(ks[1], (C_MID,), jnp.float32)
    p["conv2_w"] = 0.2 * jax.random.normal(ks[2], (C_MID, C_MID, 3, 3), jnp.float32)
    p["conv2_b"] = 0.1 * jax.random.normal(ks[3], (C_MID,), jnp.float32)
    for i, name in enumerate(("bn1", "bn2")):
        p[f"{name}_gamma"] = 1.0 + 0.1 * jax.random.normal(ks[4 + 4 * i], (C_MID,), jnp.float32)
        p[f"{name}_beta"] = 0.1 * jax.random.normal(ks[5 + 4 * i], (C_MID,), jnp.float32)
        p[f"{name}_mean"] = 0.1 * jax.random.normal(ks[6 + 4 * i], (C_MID,), jnp.float32)
        p[f"{name}_var"] = jnp.abs(1.0 + 0.1 * jax.random.normal(ks[7 + 4 * i], (C_MID,), jnp.float32))
    p["fc_w"] = 0.2 * jax.random.normal(ks[12], (NUM_CLASSES, C_MID), jnp.float32)     # torch (out, in)
    p["fc_b"] = 0.1 * jax.random.normal(ks[13], (NUM_CLASSES,), jnp.float32)
    return p


# ---------------- wrapper-side folding / layout prep (plain JAX, outside kernels) ----------------

def _bn_fold(p, name, w_oihw, b):
    # eval-mode BN folded into the preceding conv: y = conv(x; w*scale) + (b*scale + shift)
    # TODO(synk): training-mode BatchNorm (batch statistics) not implemented; eval-mode only.
    scale = p[f"{name}_gamma"] / jnp.sqrt(p[f"{name}_var"] + BN_EPS)
    shift = p[f"{name}_beta"] - p[f"{name}_mean"] * scale
    w = jnp.transpose(w_oihw, (2, 3, 1, 0)) * scale            # (kh, kw, ci, co) * scale[co]
    return w, b * scale + shift


def _toeplitz_rhs(w_khkwio):
    # (3, 3, Cin, Cout) -> (3, WP*Cin, W*Cout): one block-Toeplitz GEMM RHS per kernel row kh.
    # rhs[kh, wp*Cin+ci, x*Cout+co] = w[kh, wp-x, ci, co] if 0 <= wp-x <= 2 else 0
    cin, cout = w_khkwio.shape[2], w_khkwio.shape[3]
    kw = np.arange(3)[:, None, None]
    wp = np.arange(WP)[None, :, None]
    x = np.arange(W)[None, None, :]
    sel = jnp.asarray((wp - x == kw).astype(np.float32))        # (3, WP, W) constant
    rhs = jnp.einsum("kpx,hkio->hpixo", sel, w_khkwio)          # (3, WP, Cin, W, Cout)
    return rhs.reshape(3, WP * cin, W * cout)


# ---------------- graph forward (mirrors TorchModel.forward topological walk) ----------------

def torch_model_forward(params, x_nchw):
    f32 = jnp.float32
    # fold BN into conv weights/bias; build lane-dense GEMM operands
    w1, b1 = _bn_fold(params, "bn1", params["conv1_w"], params["conv1_b"])
    w2, b2 = _bn_fold(params, "bn2", params["conv2_w"], params["conv2_b"])
    rhs1 = _toeplitz_rhs(w1)                                     # (3,  72, 128)
    rhs2 = _toeplitz_rhs(w2)                                     # (3, 144, 128)
    b1_row = jnp.tile(b1, W).reshape(1, LANES)
    b2_row = jnp.tile(b2, W).reshape(1, LANES)
    pool = jnp.asarray(np.kron(np.ones((W, 1)), np.eye(C_MID)) / (H * W), f32)   # (128, 8)
    sel = jnp.asarray(np.kron(np.eye(N), np.ones((1, H))), f32)                  # (2, 32)
    fcw = jnp.transpose(params["fc_w"])                          # (C_MID, NUM_CLASSES)
    fcb = params["fc_b"].reshape(1, NUM_CLASSES)

    # NCHW -> NHWC, zero-pad spatially, fold (w, c_in) onto lanes
    x_nhwc = jnp.transpose(x_nchw, (0, 2, 3, 1))
    x_pad = jnp.pad(x_nhwc, ((0, 0), (1, 1), (1, 1), (0, 0))).reshape(N, HP, WP * C_IN)

    # stage A: layers 0-3 (ReLU -> conv1 -> BN1 -> ReLU), output lane-dense (32, 128)
    a1 = _vmem_call(stage_a_kernel, jax.ShapeDtypeStruct((N * H, LANES), f32),
                    x_pad, rhs1, b1_row)

    # zero-pad the stage-A activation for conv2's taps (cheap XLA op on a 16 KiB array)
    a1_pad = jnp.pad(a1.reshape(N, H, W, C_MID), ((0, 0), (1, 1), (1, 1), (0, 0)))
    a1_pad = a1_pad.reshape(N, HP, WP * C_MID)

    # stage B: layers 4-10 (conv2 -> BN2 -> add skip -> ReLU -> GAP -> Linear -> LogSoftmax)
    out = _vmem_call(stage_b_kernel, jax.ShapeDtypeStruct((N, NUM_CLASSES), f32),
                     a1_pad, a1, rhs2, b2_row, pool, sel, fcw, fcb)

    # TODO(synk): Dropout layers present in some autokeras graphs are identity at eval-time
    # (omitted); arbitrary graph topologies are instantiated here as this fixed graph.
    return out


if __name__ == "__main__":
    key = jax.random.PRNGKey(0)
    kp, kx = jax.random.split(key)
    params = init_params(kp)
    x = jax.random.normal(kx, (N, C_IN, H, W), jnp.float32)      # PyTorch NCHW input
    fwd = jax.jit(torch_model_forward)
    out = fwd(params, x)
    jax.block_until_ready(out)
    assert out.shape == (N, NUM_CLASSES) and out.dtype == jnp.float32
    # log-softmax sanity: each row must exponentiate-sum to 1
    row_sums = jnp.exp(out).sum(axis=1)
    assert bool(jnp.all(jnp.abs(row_sums - 1.0) < 1e-3))
    print("KERNEL_OK")
</pallas_src>

<mosaic_0001>
module attributes {stable_mosaic.version = 11 : i64} {
  func.func @stage_a_kernel(%arg0: memref<2x18x72xf32, #tpu.memory_space<vmem>>, %arg1: memref<3x72x128xf32, #tpu.memory_space<vmem>>, %arg2: memref<1x128xf32, #tpu.memory_space<vmem>>, %arg3: memref<32x128xf32, #tpu.memory_space<vmem>>) attributes {dimension_semantics = [], scalar_prefetch = 0 : i64, scratch_operands = 0 : i64, tpu.core_type = #tpu.core_type<tc>} {
    %cst = arith.constant 0.000000e+00 : f32
    %0 = vector.broadcast %cst : f32 to vector<32x128xf32>
    %c0 = arith.constant 0 : index
    %c0_0 = arith.constant 0 : index
    %c0_1 = arith.constant 0 : index
    %1 = vector.load %arg0[%c0, %c0_0, %c0_1] : memref<2x18x72xf32, #tpu.memory_space<vmem>>, vector<2x16x72xf32>
    %cst_2 = arith.constant 0.000000e+00 : f32
    %2 = vector.broadcast %cst_2 : f32 to vector<2x16x72xf32>
    %3 = arith.maximumf %1, %2 : vector<2x16x72xf32>
    %4 = vector.shape_cast %3 : vector<2x16x72xf32> to vector<32x72xf32>
    %c0_3 = arith.constant 0 : index
    %c0_4 = arith.constant 0 : index
    %c0_5 = arith.constant 0 : index
    %5 = vector.load %arg1[%c0_3, %c0_4, %c0_5] : memref<3x72x128xf32, #tpu.memory_space<vmem>>, vector<1x72x128xf32>
    %6 = vector.shape_cast %5 : vector<1x72x128xf32> to vector<72x128xf32>
    %cst_6 = arith.constant dense<0.000000e+00> : vector<32x128xf32>
    %7 = tpu.matmul %4, %6, %cst_6 {dimension_numbers = #tpu.dot_dimension_numbers<[1], [0], [0], [1], [0, 0, 1, 1], [], []>} : vector<32x72xf32>, vector<72x128xf32>, vector<32x128xf32> -> vector<32x128xf32>
    %8 = arith.addf %0, %7 : vector<32x128xf32>
    %c0_7 = arith.constant 0 : index
    %c1 = arith.constant 1 : index
    %c0_8 = arith.constant 0 : index
    %9 = vector.load %arg0[%c0_7, %c1, %c0_8] : memref<2x18x72xf32, #tpu.memory_space<vmem>>, vector<2x16x72xf32>
    %cst_9 = arith.constant 0.000000e+00 : f32
    %10 = vector.broadcast %cst_9 : f32 to vector<2x16x72xf32>
    %11 = arith.maximumf %9, %10 : vector<2x16x72xf32>
    %12 = vector.shape_cast %11 : vector<2x16x72xf32> to vector<32x72xf32>
    %c1_10 = arith.constant 1 : index
    %c0_11 = arith.constant 0 : index
    %c0_12 = arith.constant 0 : index
    %13 = vector.load %arg1[%c1_10, %c0_11, %c0_12] : memref<3x72x128xf32, #tpu.memory_space<vmem>>, vector<1x72x128xf32>
    %14 = vector.shape_cast %13 : vector<1x72x128xf32> to vector<72x128xf32>
    %cst_13 = arith.constant dense<0.000000e+00> : vector<32x128xf32>
    %15 = tpu.matmul %12, %14, %cst_13 {dimension_numbers = #tpu.dot_dimension_numbers<[1], [0], [0], [1], [0, 0, 1, 1], [], []>} : vector<32x72xf32>, vector<72x128xf32>, vector<32x128xf32> -> vector<32x128xf32>
    %16 = arith.addf %8, %15 : vector<32x128xf32>
    %c0_14 = arith.constant 0 : index
    %c2 = arith.constant 2 : index
    %c0_15 = arith.constant 0 : index
    %17 = vector.load %arg0[%c0_14, %c2, %c0_15] : memref<2x18x72xf32, #tpu.memory_space<vmem>>, vector<2x16x72xf32>
    %cst_16 = arith.constant 0.000000e+00 : f32
    %18 = vector.broadcast %cst_16 : f32 to vector<2x16x72xf32>
    %19 = arith.maximumf %17, %18 : vector<2x16x72xf32>
    %20 = vector.shape_cast %19 : vector<2x16x72xf32> to vector<32x72xf32>
    %c2_17 = arith.constant 2 : index
    %c0_18 = arith.constant 0 : index
    %c0_19 = arith.constant 0 : index
    %21 = vector.load %arg1[%c2_17, %c0_18, %c0_19] : memref<3x72x128xf32, #tpu.memory_space<vmem>>, vector<1x72x128xf32>
    %22 = vector.shape_cast %21 : vector<1x72x128xf32> to vector<72x128xf32>
    %cst_20 = arith.constant dense<0.000000e+00> : vector<32x128xf32>
    %23 = tpu.matmul %20, %22, %cst_20 {dimension_numbers = #tpu.dot_dimension_numbers<[1], [0], [0], [1], [0, 0, 1, 1], [], []>} : vector<32x72xf32>, vector<72x128xf32>, vector<32x128xf32> -> vector<32x128xf32>
    %24 = arith.addf %16, %23 : vector<32x128xf32>
    %c0_21 = arith.constant 0 : index
    %c0_22 = arith.constant 0 : index
    %25 = vector.load %arg2[%c0_21, %c0_22] : memref<1x128xf32, #tpu.memory_space<vmem>>, vector<1x128xf32>
    %26 = vector.broadcast %25 : vector<1x128xf32> to vector<32x128xf32>
    %27 = arith.addf %24, %26 : vector<32x128xf32>
    %cst_23 = arith.constant 0.000000e+00 : f32
    %28 = vector.broadcast %cst_23 : f32 to vector<32x128xf32>
    %29 = arith.maximumf %27, %28 : vector<32x128xf32>
    %c0_24 = arith.constant 0 : index
    %c0_25 = arith.constant 0 : index
    %30 = vector.load %arg3[%c0_24, %c0_25] : memref<32x128xf32, #tpu.memory_space<vmem>>, vector<32x128xf32>
    tpu.vector_store %arg3[%c0_24, %c0_25], %29 {strides = array<i32>} : memref<32x128xf32, #tpu.memory_space<vmem>>, vector<32x128xf32>,
    return
  }
}

module attributes {stable_mosaic.version = 11 : i64} {
  func.func @stage_b_kernel(%arg0: memref<2x18x144xf32, #tpu.memory_space<vmem>>, %arg1: memref<32x128xf32, #tpu.memory_space<vmem>>, %arg2: memref<3x144x128xf32, #tpu.memory_space<vmem>>, %arg3: memref<1x128xf32, #tpu.memory_space<vmem>>, %arg4: memref<128x8xf32, #tpu.memory_space<vmem>>, %arg5: memref<2x32xf32, #tpu.memory_space<vmem>>, %arg6: memref<8x10xf32, #tpu.memory_space<vmem>>, %arg7: memref<1x10xf32, #tpu.memory_space<vmem>>, %arg8: memref<2x10xf32, #tpu.memory_space<vmem>>) attributes {dimension_semantics = [], scalar_prefetch = 0 : i64, scratch_operands = 0 : i64, tpu.core_type = #tpu.core_type<tc>} {
    %cst = arith.constant 0.000000e+00 : f32
    %0 = vector.broadcast %cst : f32 to vector<32x128xf32>
    %c0 = arith.constant 0 : index
    %c0_0 = arith.constant 0 : index
    %c0_1 = arith.constant 0 : index
    %1 = vector.load %arg0[%c0, %c0_0, %c0_1] : memref<2x18x144xf32, #tpu.memory_space<vmem>>, vector<2x16x144xf32>
    %2 = vector.shape_cast %1 : vector<2x16x144xf32> to vector<32x144xf32>
    %c0_2 = arith.constant 0 : index
    %c0_3 = arith.constant 0 : index
    %c0_4 = arith.constant 0 : index
    %3 = vector.load %arg2[%c0_2, %c0_3, %c0_4] : memref<3x144x128xf32, #tpu.memory_space<vmem>>, vector<1x144x128xf32>
    %4 = vector.shape_cast %3 : vector<1x144x128xf32> to vector<144x128xf32>
    %cst_5 = arith.constant dense<0.000000e+00> : vector<32x128xf32>
    %5 = tpu.matmul %2, %4, %cst_5 {dimension_numbers = #tpu.dot_dimension_numbers<[1], [0], [0], [1], [0, 0, 1, 1], [], []>} : vector<32x144xf32>, vector<144x128xf32>, vector<32x128xf32> -> vector<32x128xf32>
    %6 = arith.addf %0, %5 : vector<32x128xf32>
    %c0_6 = arith.constant 0 : index
    %c1 = arith.constant 1 : index
    %c0_7 = arith.constant 0 : index
    %7 = vector.load %arg0[%c0_6, %c1, %c0_7] : memref<2x18x144xf32, #tpu.memory_space<vmem>>, vector<2x16x144xf32>
    %8 = vector.shape_cast %7 : vector<2x16x144xf32> to vector<32x144xf32>
    %c1_8 = arith.constant 1 : index
    %c0_9 = arith.constant 0 : index
    %c0_10 = arith.constant 0 : index
    %9 = vector.load %arg2[%c1_8, %c0_9, %c0_10] : memref<3x144x128xf32, #tpu.memory_space<vmem>>, vector<1x144x128xf32>
    %10 = vector.shape_cast %9 : vector<1x144x128xf32> to vector<144x128xf32>
    %cst_11 = arith.constant dense<0.000000e+00> : vector<32x128xf32>
    %11 = tpu.matmul %8, %10, %cst_11 {dimension_numbers = #tpu.dot_dimension_numbers<[1], [0], [0], [1], [0, 0, 1, 1], [], []>} : vector<32x144xf32>, vector<144x128xf32>, vector<32x128xf32> -> vector<32x128xf32>
    %12 = arith.addf %6, %11 : vector<32x128xf32>
    %c0_12 = arith.constant 0 : index
    %c2 = arith.constant 2 : index
    %c0_13 = arith.constant 0 : index
    %13 = vector.load %arg0[%c0_12, %c2, %c0_13] : memref<2x18x144xf32, #tpu.memory_space<vmem>>, vector<2x16x144xf32>
    %14 = vector.shape_cast %13 : vector<2x16x144xf32> to vector<32x144xf32>
    %c2_14 = arith.constant 2 : index
    %c0_15 = arith.constant 0 : index
    %c0_16 = arith.constant 0 : index
    %15 = vector.load %arg2[%c2_14, %c0_15, %c0_16] : memref<3x144x128xf32, #tpu.memory_space<vmem>>, vector<1x144x128xf32>
    %16 = vector.shape_cast %15 : vector<1x144x128xf32> to vector<144x128xf32>
    %cst_17 = arith.constant dense<0.000000e+00> : vector<32x128xf32>
    %17 = tpu.matmul %14, %16, %cst_17 {dimension_numbers = #tpu.dot_dimension_numbers<[1], [0], [0], [1], [0, 0, 1, 1], [], []>} : vector<32x144xf32>, vector<144x128xf32>, vector<32x128xf32> -> vector<32x128xf32>
    %18 = arith.addf %12, %17 : vector<32x128xf32>
    %c0_18 = arith.constant 0 : index
    %c0_19 = arith.constant 0 : index
    %19 = vector.load %arg3[%c0_18, %c0_19] : memref<1x128xf32, #tpu.memory_space<vmem>>, vector<1x128xf32>
    %20 = vector.broadcast %19 : vector<1x128xf32> to vector<32x128xf32>
    %21 = arith.addf %18, %20 : vector<32x128xf32>
    %c0_20 = arith.constant 0 : index
    %c0_21 = arith.constant 0 : index
    %22 = vector.load %arg1[%c0_20, %c0_21] : memref<32x128xf32, #tpu.memory_space<vmem>>, vector<32x128xf32>
    %23 = arith.addf %22, %21 : vector<32x128xf32>
    %cst_22 = arith.constant 0.000000e+00 : f32
    %24 = vector.broadcast %cst_22 : f32 to vector<32x128xf32>
    %25 = arith.maximumf %23, %24 : vector<32x128xf32>
    %c0_23 = arith.constant 0 : index
    %c0_24 = arith.constant 0 : index
    %26 = vector.load %arg4[%c0_23, %c0_24] : memref<128x8xf32, #tpu.memory_space<vmem>>, vector<128x8xf32>
    %cst_25 = arith.constant dense<0.000000e+00> : vector<32x8xf32>
    %27 = tpu.matmul %25, %26, %cst_25 {dimension_numbers = #tpu.dot_dimension_numbers<[1], [0], [0], [1], [0, 0, 1, 1], [], []>} : vector<32x128xf32>, vector<128x8xf32>, vector<32x8xf32> -> vector<32x8xf32>
    %c0_26 = arith.constant 0 : index
    %c0_27 = arith.constant 0 : index
    %28 = vector.load %arg5[%c0_26, %c0_27] : memref<2x32xf32, #tpu.memory_space<vmem>>, vector<2x32xf32>
    %cst_28 = arith.constant dense<0.000000e+00> : vector<2x8xf32>
    %29 = tpu.matmul %28, %27, %cst_28 {dimension_numbers = #tpu.dot_dimension_numbers<[1], [0], [0], [1], [0, 0, 1, 1], [], []>} : vector<2x32xf32>, vector<32x8xf32>, vector<2x8xf32> -> vector<2x8xf32>
    %c0_29 = arith.constant 0 : index
    %c0_30 = arith.constant 0 : index
    %30 = vector.load %arg6[%c0_29, %c0_30] : memref<8x10xf32, #tpu.memory_space<vmem>>, vector<8x10xf32>
    %cst_31 = arith.constant dense<0.000000e+00> : vector<2x10xf32>
    %31 = tpu.matmul %29, %30, %cst_31 {dimension_numbers = #tpu.dot_dimension_numbers<[1], [0], [0], [1], [0, 0, 1, 1], [], []>} : vector<2x8xf32>, vector<8x10xf32>, vector<2x10xf32> -> vector<2x10xf32>
    %c0_32 = arith.constant 0 : index
    %c0_33 = arith.constant 0 : index
    %32 = vector.load %arg7[%c0_32, %c0_33] : memref<1x10xf32, #tpu.memory_space<vmem>>, vector<1x10xf32>
    %33 = vector.broadcast %32 : vector<1x10xf32> to vector<2x10xf32>
    %34 = arith.addf %31, %33 : vector<2x10xf32>
    %cst_34 = arith.constant dense<0xFF800000> : vector<2xf32>
    %35 = vector.multi_reduction <maximumf>, %34, %cst_34 [1] : vector<2x10xf32> to vector<2xf32>
    %36 = vector.shape_cast %35 : vector<2xf32> to vector<2x1xf32>
    %37 = vector.broadcast %36 : vector<2x1xf32> to vector<2x10xf32>
    %38 = arith.subf %34, %37 : vector<2x10xf32>
    %39 = math.exp %38 : vector<2x10xf32>
    %cst_35 = arith.constant dense<0.000000e+00> : vector<2xf32>
    %40 = vector.multi_reduction <add>, %39, %cst_35 [1] : vector<2x10xf32> to vector<2xf32>
    %41 = vector.shape_cast %40 : vector<2xf32> to vector<2x1xf32>
    %42 = math.log %41 : vector<2x1xf32>
    %43 = vector.broadcast %42 : vector<2x1xf32> to vector<2x10xf32>
    %44 = arith.subf %38, %43 : vector<2x10xf32>
    %c0_36 = arith.constant 0 : index
    %c0_37 = arith.constant 0 : index
    %45 = vector.load %arg8[%c0_36, %c0_37] : memref<2x10xf32, #tpu.memory_space<vmem>>, vector<2x10xf32>
    tpu.vector_store %arg8[%c0_36, %c0_37], %44 {strides = array<i32>} : memref<2x10xf32, #tpu.memory_space<vmem>>, vector<2x10xf32>,
    return
  }
}

</mosaic_0001>

<bundles_post_ra>
// kernel: tile.18
= control target key start
LH: loop header
LB: loop body
LE: loop exit
PB: predicated region body
PF: predicated region fallthrough
CT: control target
= control target key end

     0   :  { %s28_s0 = inlined_call_operand.vmem [shape: f32[8], index: 0, kind: input, shape index: {}]   ;;  %s29_s1 = inlined_call_operand.vmem [shape: f32[16,8], index: 1, kind: output, shape index: {}]  }
   0x1   :  { %v4_v0 = vld [vmem:[%s28_s0] ss:$0 sm:$0xff] }
   0x2   :  { %5 = vst [vmem:[%s29_s1] sm:$0xff] %v4_v0 }
   0x3   :  { %8 = vst [vmem:[%s29_s1 + $0x8] sm:$0xff] %v4_v0 }

// kernel: tile.19
= control target key start
LH: loop header
LB: loop body
LE: loop exit
PB: predicated region body
PF: predicated region fallthrough
CT: control target
= control target key end

     0   :  { %s131_s10 = smov 120   ;;  %s132_s11 = smov 104   ;;  %vm3_vm0 = vcmask 64512   ;;  %vm9_vm1 = vcmask 1048512   ;;  %vm15_vm2 = vcmask 982912   ;;  %vm21_vm3 = vcmask 917312   ;;  %s207_s0 = inlined_call_operand.vmem [shape: f32[16,8], index: 0, kind: input, shape index: {}]   ;;  %s208_s1 = inlined_call_operand.vmem [shape: f32[1,128], index: 1, kind: output, shape index: {}]  }
   0x1   :  { %v101_v0 = vld [vmem:[%s207_s0 + $0xf] sm:$0x1]   ;;  %v103_v1 = vld [vmem:[%s207_s0 + $0xd] sm:$0x1]   ;;  %v105_v2 = vld [vmem:[%s207_s0 + $0xb] sm:$0x1]  }
   0x2   :  { %7 = vrot.lane.b32.xlu0 %v101_v0, %s131_s10  ;;  %19 = vrot.lane.b32.xlu1 %v103_v1, %s132_s11  ;;  %s133_s14 = smov 88   ;;  %v102_v3 = vld [vmem:[%s207_s0 + $0xe] sm:$0x1]   ;;  %v104_v4 = vld [vmem:[%s207_s0 + $0xc] sm:$0x1]   ;;  %s134_s19 = smov 112  }
   0x3   :  { %31 = vrot.lane.b32.xlu2 %v105_v2, %s133_s14  ;;  %s135_s20 = smov 96   ;;  %v106_v5 = vld [vmem:[%s207_s0 + $0xa] sm:$0x1]   ;;  %s136_s23 = smov 80   ;;  %v107_v6 = vld [vmem:[%s207_s0 + $0x9] sm:$0x1]  }
   0x4   :  { %v108_v7 = vld [vmem:[%s207_s0 + $0x8] sm:$0x1]   ;;  %s137_s28 = smov 72   ;;  %s138_s29 = smov 64   ;;  %v109_v8 = vld [vmem:[%s207_s0 + $0x7] sm:$0x1]  }
   0x5   :  { %s139_s3 = smov 56   ;;  %v110_v9 = vld [vmem:[%s207_s0 + $0x6] sm:$0x1]   ;;  %v111_v10 = vld [vmem:[%s207_s0 + $0x5] sm:$0x1]   ;;  %s140_s8 = smov 48  }
   0x6   :  { %s141_s9 = smov 40   ;;  %v112_v11 = vld [vmem:[%s207_s0 + $0x4] sm:$0x1]   ;;  %s142_s12 = smov 32   ;;  %v113_v12 = vld [vmem:[%s207_s0 + $0x3] sm:$0x1]  }
   0x7   :  { %v114_v13 = vld [vmem:[%s207_s0 + $0x2] sm:$0x1]   ;;  %s143_s17 = smov 24   ;;  %s144_s18 = smov 16   ;;  %v115_v14 = vld [vmem:[%s207_s0 + $0x1] sm:$0x1]  }
   0x8   :  { %s145_s21 = smov 8   ;;  %v2_v15 = vld [vmem:[%s207_s0] sm:$0x1]   ;;  %vm27_vm4 = vcmask 851712   ;;  %vm33_vm5 = vcmask 786112   ;;  %vm39_vm6 = vcmask 720512  }
   0x9   :  { %4 = vst.msk [vmem:[#allocation0] sm:$0x1] %vm3_vm0, %v2_v15   ;;  %vm45_vm7 = vcmask 654912   ;;  %vm51_vm8 = vcmask 589312   ;;  %vm57_vm9 = vcmask 523712   ;;  %vm63_vm10 = vcmask 458112  }
   0xa   :  { %13 = vrot.lane.b32.xlu0 %v102_v3, %s134_s19  ;;  %25 = vrot.lane.b32.xlu1 %v104_v4, %s135_s20  ;;  %vm69_vm11 = vcmask 392512   ;;  %vm75_vm12 = vcmask 326912   ;;  %vm81_vm13 = vcmask 261312   ;;  %vm87_vm14 = vcmask 195712  }
   0xb   :  { %37 = vrot.lane.b32.xlu2 %v106_v5, %s136_s23  ;;  %vm93_vm15 = vcmask 130112  }
  0x12   :  { %43 = vrot.lane.b32.xlu0 %v107_v6, %s137_s28  ;;  %49 = vrot.lane.b32.xlu1 %v108_v7, %s138_s29 }
  0x13   :  { %55 = vrot.lane.b32.xlu2 %v109_v8, %s139_s3 }
  0x1a   :  { %61 = vrot.lane.b32.xlu0 %v110_v9, %s140_s8  ;;  %67 = vrot.lane.b32.xlu1 %v111_v10, %s141_s9 }
  0x1b   :  { %73 = vrot.lane.b32.xlu2 %v112_v11, %s142_s12 }
  0x22   :  { %79 = vrot.lane.b32.xlu0 %v113_v12, %s143_s17  ;;  %85 = vrot.lane.b32.xlu1 %v114_v13, %s144_s18 }
  0x23   :  { %91 = vrot.lane.b32.xlu2 %v115_v14, %s145_s21 }
  0x5d   :  { %v32_v16 = vpop.permute.xlu2 %31  }
  0x65   :  { %v38_v17 = vpop.permute.xlu2 %37  }
  0x6d   :  { %v56_v18 = vpop.permute.xlu2 %55  }
  0x74   :  { %v8_v19 = vpop.permute.xlu0 %7   ;;  %v20_v20 = vpop.permute.xlu1 %19  }
  0x75   :  { %10 = vst.msk [vmem:[#allocation0] sm:$0x1] %vm9_vm1, %v8_v19   ;;  %v74_v21 = vpop.permute.xlu2 %73  }
  0x7c   :  { %v14_v22 = vpop.permute.xlu0 %13   ;;  %v26_v23 = vpop.permute.xlu1 %25  }
  0x7d   :  { %16 = vst.msk [vmem:[#allocation0] sm:$0x1] %vm15_vm2, %v14_v22   ;;  %v92_v24 = vpop.permute.xlu2 %91  }
  0x7e   :  { %22 = vst.msk [vmem:[#allocation0] sm:$0x1] %vm21_vm3, %v20_v20  }
  0x7f   :  { %28 = vst.msk [vmem:[#allocation0] sm:$0x1] %vm27_vm4, %v26_v23  }
  0x80   :  { %34 = vst.msk [vmem:[#allocation0] sm:$0x1] %vm33_vm5, %v32_v16  }
  0x81   :  { %40 = vst.msk [vmem:[#allocation0] sm:$0x1] %vm39_vm6, %v38_v17  }
  0x84   :  { %v44_v25 = vpop.permute.xlu0 %43   ;;  %v50_v26 = vpop.permute.xlu1 %49  }
  0x85   :  { %46 = vst.msk [vmem:[#allocation0] sm:$0x1] %vm45_vm7, %v44_v25  }
  0x86   :  { %52 = vst.msk [vmem:[#allocation0] sm:$0x1] %vm51_vm8, %v50_v26  }
  0x87   :  { %58 = vst.msk [vmem:[#allocation0] sm:$0x1] %vm57_vm9, %v56_v18  }
  0x8c   :  { %v62_v27 = vpop.permute.xlu0 %61   ;;  %v68_v28 = vpop.permute.xlu1 %67  }
  0x8d   :  { %64 = vst.msk [vmem:[#allocation0] sm:$0x1] %vm63_vm10, %v62_v27  }
  0x8e   :  { %70 = vst.msk [vmem:[#allocation0] sm:$0x1] %vm69_vm11, %v68_v28  }
  0x8f   :  { %76 = vst.msk [vmem:[#allocation0] sm:$0x1] %vm75_vm12, %v74_v21  }
  0x94   :  { %v80_v29 = vpop.permute.xlu0 %79   ;;  %v86_v30 = vpop.permute.xlu1 %85  }
  0x95   :  { %82 = vst.msk [vmem:[#allocation0] sm:$0x1] %vm81_vm13, %v80_v29  }
  0x96   :  { %88 = vst.msk [vmem:[#allocation0] sm:$0x1] %vm87_vm14, %v86_v30  }
  0x97   :  { %94 = vst.msk [vmem:[#allocation0] sm:$0x1] %vm93_vm15, %v92_v24  }
  0x9e   :  { %v97_v31 = vld [vmem:[#allocation0] sm:$0x1] }
  0x9f   :  { %100 = vst [vmem:[%s208_s1] sm:$0x1] %v97_v31 }

// kernel: torch_model_forward.2
= control target key start
LH: loop header
LB: loop body
LE: loop exit
PB: predicated region body
PF: predicated region fallthrough
CT: control target
= control target key end

     0   :  { %vm49_vm0 = vcmask 588800   ;;  %s419_s1 = inlined_call_operand.vmem [shape: f32[3,72,128], index: 1, kind: input, shape index: {}]   ;;  %s420_s0 = inlined_call_operand.vmem [shape: f32[2,18,72], index: 0, kind: input, shape index: {}]   ;;  %s421_s2 = inlined_call_operand.vmem [shape: f32[1,128], index: 2, kind: input, shape index: {}]   ;;  %s422_s3 = inlined_call_operand.vmem [shape: f32[32,128], index: 3, kind: output, shape index: {}]  }
   0x1   :  { %v240_v0 = vld [vmem:[%s419_s1 + $0xd0] sm:$0xff]  ;;  %v239_v1 = vld [vmem:[%s419_s1 + $0xc8] sm:$0xff]  ;;  %v30_v3 = vld [vmem:[%s419_s1 + $0x40] sm:$0xff] }
   0x2   :  { %v223_v2 = vld [vmem:[%s419_s1 + $0x88] sm:$0xff]  ;;  %169 = vmatpush.msra.mxu2 %v240_v0  ;;  %v222_v4 = vld [vmem:[%s419_s1 + $0x80] sm:$0xff]  ;;  %110 = vmatpush.msra.mxu1 %v30_v3  ;;  %v29_v6 = vld [vmem:[%s419_s1 + $0x38] sm:$0xff] }
   0x3   :  { %69 = vmatpush.msra.mxu0 %v223_v2  ;;  %v238_v5 = vld [vmem:[%s419_s1 + $0xc0] sm:$0xff]  ;;  %245 = vmatpush.msra.mxu3 %v223_v2  ;;  %v221_v7 = vld [vmem:[%s419_s1 + $0x78] sm:$0xff]  ;;  %v28_v8 = vld [vmem:[%s419_s1 + $0x30] sm:$0xff] }
   0x4   :  { %170 = vmatpush.msra.mxu2 %v239_v1  ;;  %111 = vmatpush.msra.mxu1 %v29_v6  ;;  %v237_v9 = vld [vmem:[%s419_s1 + $0xb8] sm:$0xff]  ;;  %v220_v10 = vld [vmem:[%s419_s1 + $0x70] sm:$0xff]  ;;  %v27_v11 = vld [vmem:[%s419_s1 + $0x28] sm:$0xff] }
   0x5   :  { %70 = vmatpush.msra.mxu0 %v222_v4  ;;  %246 = vmatpush.msra.mxu3 %v222_v4  ;;  %v236_v12 = vld [vmem:[%s419_s1 + $0xb0] sm:$0xff]  ;;  %v219_v13 = vld [vmem:[%s419_s1 + $0x68] sm:$0xff]  ;;  %v26_v14 = vld [vmem:[%s419_s1 + $0x20] sm:$0xff] }
   0x6   :  { %171 = vmatpush.msra.mxu2 %v238_v5  ;;  %112 = vmatpush.msra.mxu1 %v28_v8  ;;  %v235_v15 = vld [vmem:[%s419_s1 + $0xa8] sm:$0xff]  ;;  %v218_v16 = vld [vmem:[%s419_s1 + $0x60] sm:$0xff]  ;;  %v25_v17 = vld [vmem:[%s419_s1 + $0x18] sm:$0xff] }
   0x7   :  { %71 = vmatpush.msra.mxu0 %v221_v7  ;;  %247 = vmatpush.msra.mxu3 %v221_v7  ;;  %v234_v18 = vld [vmem:[%s419_s1 + $0xa0] sm:$0xff]  ;;  %v217_v19 = vld [vmem:[%s419_s1 + $0x58] sm:$0xff]  ;;  %v24_v21 = vld [vmem:[%s419_s1 + $0x10] sm:$0xff] }
   0x8   :  { %172 = vmatpush.msra.mxu2 %v237_v9  ;;  %113 = vmatpush.msra.mxu1 %v27_v11  ;;  %v233_v20 = vld [vmem:[%s419_s1 + $0x98] sm:$0xff]  ;;  %v132_v22 = vld [vmem:[%s420_s0 + $0x2] sm:$0xff]  ;;  %v216_v23 = vld [vmem:[%s419_s1 + $0x50] sm:$0xff] }
   0x9   :  { %72 = vmatpush.msra.mxu0 %v220_v10  ;;  %248 = vmatpush.msra.mxu3 %v220_v10  ;;  %v31_v24 = vld [vmem:[%s420_s0 + $0x1] sm:$0xff]  ;;  %v232_v27 = vld [vmem:[%s419_s1 + $0x90] sm:$0xff]  ;;  %v136_v28 = vmax.f32 %v132_v22, 0.0  ;;  %v33_v38 = vld [vmem:[%s420_s0 + $0x19] sm:$0xff] }
   0xa   :  { %173 = vmatpush.msra.mxu2 %v236_v12  ;;  %114 = vmatpush.msra.mxu1 %v26_v14  ;;  %v14_v25 = vld [vmem:[%s420_s0] sm:$0xff]  ;;  %v23_v26 = vld [vmem:[%s419_s1 + $0x8] sm:$0xff]  ;;  %v35_v32 = vmax.f32 %v31_v24, 0.0  ;;  %v37_v40 = vmax.f32 %v33_v38, 0.0  ;;  %v16_v42 = vld [vmem:[%s420_s0 + $0x18] sm:$0xff] }
   0xb   :  { %73 = vmatpush.msra.mxu0 %v219_v13  ;;  %249 = vmatpush.msra.mxu3 %v219_v13  ;;  %v215_v29 = vld [vmem:[%s419_s1 + $0x48] sm:$0xff]  ;;  %v22_v31 = vld [vmem:[%s419_s1] sm:$0xff]  ;;  %v18_v33 = vmax.f32 %v14_v25, 0.0  ;;  %v20_v45 = vmax.f32 %v16_v42, 0.0 }
   0xc   :  { %174 = vmatpush.msra.mxu2 %v235_v15  ;;  %115 = vmatpush.msra.mxu1 %v25_v17  ;;  %v32_v30 = vld [vmem:[%s420_s0 + $0x9] sm:$0xff]  ;;  %v134_v41 = vld [vmem:[%s420_s0 + $0x1a] sm:$0xff] }
   0xd   :  { %74 = vmatpush.msra.mxu0 %v218_v16  ;;  %250 = vmatpush.msra.mxu3 %v218_v16  ;;  %v36_v34 = vmax.f32 %v32_v30, 0.0  ;;  %v133_v35 = vld [vmem:[%s420_s0 + $0xa] sm:$0xff]  ;;  %v138_v43 = vmax.f32 %v134_v41, 0.0  ;;  %v34_v44 = vld [vmem:[%s420_s0 + $0x21] sm:$0xff]  ;;  %v254_v54 = vld [vmem:[%s421_s2] ss:$0 sm:$0xff] }
   0xe   :  { %175 = vmatpush.msra.mxu2 %v234_v18  ;;  %116 = vmatpush.msra.mxu1 %v24_v21  ;;  %v15_v36 = vld [vmem:[%s420_s0 + $0x8] sm:$0xff]  ;;  %v137_v37 = vmax.f32 %v133_v35, 0.0  ;;  %v38_v46 = vmax.f32 %v34_v44, 0.0  ;;  %v17_v48 = vld [vmem:[%s420_s0 + $0x20] sm:$0xff] }
   0xf   :  { %75 = vmatpush.msra.mxu0 %v217_v19  ;;  %251 = vmatpush.msra.mxu3 %v217_v19  ;;  %v19_v39 = vmax.f32 %v15_v36, 0.0  ;;  %v135_v47 = vld [vmem:[%s420_s0 + $0x22] sm:$0xff]  ;;  %v21_v50 = vmax.f32 %v17_v48, 0.0 }
  0x10   :  { %176 = vmatpush.msra.mxu2 %v233_v20  ;;  %117 = vmatpush.msra.mxu1 %v23_v26  ;;  %v139_v49 = vmax.f32 %v135_v47, 0.0 }
  0x11   :  { %76 = vmatpush.msra.mxu0 %v216_v23  ;;  %252 = vmatpush.msra.mxu3 %v216_v23 }
  0x12   :  { %177 = vmatpush.msra.mxu2 %v232_v27  ;;  %118 = vmatpush.msra.mxu1 %v22_v31 }
  0x13   :  { %77 = vmatpush.msra.mxu0 %v215_v29  ;;  %241 = vmatmul.msk.f32.vlgmr.msra.gmra.mxu2 %vm49_vm0, %v136_v28 }
  0x14   :  { %224 = vmatmul.msk.f32.vlgmr.msra.gmra.mxu0 %vm49_vm0, %v35_v32  ;;  %228 = vmatmul.msk.f32.vlgmr.msra.gmra.mxu1 %vm49_vm0, %v18_v33 }
  0x15   :  { %253 = vmatpush.msra.mxu3 %v215_v29 }
  0x16   :  { %225 = vmatmul.msk.f32.vlgmr.msra.gmra.mxu3 %vm49_vm0, %v36_v34 }
  0x1b   :  { %242 = vmatmul.msk.f32.gmra.mxu2 %vm49_vm0, %v137_v37 }
  0x1c   :  { %229 = vmatmul.msk.f32.gmra.mxu1 %vm49_vm0, %v19_v39 }
  0x1e   :  { %226 = vmatmul.msk.f32.gmra.mxu3 %vm49_vm0, %v37_v40 }
  0x23   :  { %243 = vmatmul.msk.f32.gmra.mxu2 %vm49_vm0, %v138_v43 }
  0x24   :  { %230 = vmatmul.msk.f32.gmra.mxu1 %vm49_vm0, %v20_v45 }
  0x26   :  { %227 = vmatmul.msk.f32.gmra.mxu3 %vm49_vm0, %v38_v46 }
  0x2b   :  { %244 = vmatmul.msk.f32.gmra.mxu2 %vm49_vm0, %v139_v49 }
  0x2c   :  { %231 = vmatmul.msk.f32.gmra.mxu1 %vm49_vm0, %v21_v50 }
  0x91   :  { %v79_v51 = vpop.f32.mrf.mxu0  ;;  %v120_v52 = vpop.f32.mrf.mxu1 }
  0x92   :  { %v121_v53 = vadd.f32 %v120_v52, %v79_v51 }
  0x96   :  { %v179_v55 = vpop.f32.mrf.mxu2 }
  0x97   :  { %v191_v56 = vadd.f32 %v179_v55, %v121_v53 }
  0x99   :  { %v199_v57 = vadd.f32 %v254_v54, %v191_v56  ;;  %v82_v58 = vpop.f32.mrf.mxu3  ;;  %v123_v59 = vpop.f32.mrf.mxu1 }
  0x9a   :  { %v124_v61 = vadd.f32 %v123_v59, %v82_v58 }
  0x9b   :  { %v203_v60 = vmax.f32 %v199_v57, 0.0 }
  0x9d   :  { %207 = vst [vmem:[%s422_s3] sm:$0xff] %v203_v60 }
  0x9e   :  { %v182_v62 = vpop.f32.mrf.mxu2 }
  0x9f   :  { %v192_v63 = vadd.f32 %v182_v62, %v124_v61 }
  0xa1   :  { %v200_v0 = vadd.f32 %v254_v54, %v192_v63  ;;  %v85_v1 = vpop.f32.mrf.mxu3  ;;  %v126_v2 = vpop.f32.mrf.mxu1 }
  0xa2   :  { %v127_v4 = vadd.f32 %v126_v2, %v85_v1 }
  0xa3   :  { %v204_v3 = vmax.f32 %v200_v0, 0.0 }
  0xa5   :  { %208 = vst [vmem:[%s422_s3 + $0x8] sm:$0xff] %v204_v3 }
  0xa6   :  { %v185_v5 = vpop.f32.mrf.mxu2 }
  0xa7   :  { %v193_v6 = vadd.f32 %v185_v5, %v127_v4 }
  0xa9   :  { %v201_v7 = vadd.f32 %v254_v54, %v193_v6  ;;  %v88_v8 = vpop.f32.mrf.mxu3  ;;  %v129_v9 = vpop.f32.mrf.mxu1 }
  0xaa   :  { %v130_v11 = vadd.f32 %v129_v9, %v88_v8 }
  0xab   :  { %v205_v10 = vmax.f32 %v201_v7, 0.0 }
  0xad   :  { %209 = vst [vmem:[%s422_s3 + $0x10] sm:$0xff] %v205_v10 }
  0xae   :  { %v188_v12 = vpop.f32.mrf.mxu2 }
  0xaf   :  { %v194_v13 = vadd.f32 %v188_v12, %v130_v11 }
  0xb1   :  { %v202_v14 = vadd.f32 %v254_v54, %v194_v13 }
  0xb3   :  { %v206_v15 = vmax.f32 %v202_v14, 0.0 }
  0xb5   :  { %210 = vst [vmem:[%s422_s3 + $0x18] sm:$0xff] %v206_v15 }

// kernel: torch_model_forward.3
= control target key start
LH: loop header
LB: loop body
LE: loop exit
PB: predicated region body
PF: predicated region fallthrough
CT: control target
= control target key end

     0   :  { %vm120_vm0 = vcmask 130048   ;;  %vm76_vm1 = vcmask 1046528   ;;  %s1050_s0 = inlined_call_operand.vmem [shape: f32[2,18,144], index: 0, kind: input, shape index: {}]   ;;  %s1051_s1 = inlined_call_operand.vmem [shape: f32[32,128], index: 1, kind: input, shape index: {}]   ;;  %s1052_s2 = inlined_call_operand.vmem [shape: f32[3,144,128], index: 2, kind: input, shape index: {}]   ;;  %s1053_s3 = inlined_call_operand.vmem [shape: f32[1,128], index: 3, kind: input, shape index: {}]   ;;  %s1054_s4 = inlined_call_operand.vmem [shape: f32[128,8], index: 4, kind: input, shape index: {}]   ;;  %s1055_s5 = inlined_call_operand.vmem [shape: f32[2,32], index: 5, kind: input, shape index: {}]   ;;  %s1056_s6 = inlined_call_operand.vmem [shape: f32[8,10], index: 6, kind: input, shape index: {}]   ;;  %s1057_s7 = inlined_call_operand.vmem [shape: f32[1,10], index: 7, kind: input, shape index: {}]   ;;  %s1058_s8 = inlined_call_operand.hbm [shape: f32[2,10], index: 8, kind: output, shape index: {}]  }
   0x1   :  { %v549_v0 = vld [vmem:[%s1052_s2 + $0x108] sm:$0xff]  ;;  %v53_v1 = vld [vmem:[%s1052_s2 + $0x78] sm:$0xff]  ;;  %v548_v3 = vld [vmem:[%s1052_s2 + $0x100] sm:$0xff] }
   0x2   :  { %v55_v2 = vld [vmem:[%s1052_s2 + $0x88] sm:$0xff]  ;;  %129 = vmatpush.msra.mxu0 %v549_v0  ;;  %197 = vmatpush.msra.mxu2 %v53_v1  ;;  %v52_v4 = vld [vmem:[%s1052_s2 + $0x70] sm:$0xff]  ;;  %v54_v5 = vld [vmem:[%s1052_s2 + $0x80] sm:$0xff] }
   0x3   :  { %240 = vmatpush.msra.mxu3 %v55_v2  ;;  %v31_v6 = vld [vmem:[%s1050_s0 + $0x8] sm:$0xff]  ;;  %v547_v7 = vld [vmem:[%s1052_s2 + $0xf8] sm:$0xff]  ;;  %v546_v11 = vld [vmem:[%s1052_s2 + $0xf0] sm:$0xff] }
   0x4   :  { %130 = vmatpush.msra.mxu0 %v548_v3  ;;  %198 = vmatpush.msra.mxu2 %v52_v4  ;;  %v51_v8 = vld [vmem:[%s1052_s2 + $0x68] sm:$0xff]  ;;  %v551_v10 = vld [vmem:[%s1052_s2 + $0x118] sm:$0xff]  ;;  %v550_v12 = vld [vmem:[%s1052_s2 + $0x110] sm:$0xff] }
   0x5   :  { %v577_v9 = vld [vmem:[%s1052_s2 + $0x1a8] sm:$0xff]  ;;  %241 = vmatpush.msra.mxu3 %v54_v5  ;;  %172 = vmatpush.msra.mxu1 %v551_v10  ;;  %v50_v13 = vld [vmem:[%s1052_s2 + $0x60] sm:$0xff]  ;;  %v741_v14 = vld [vmem:[%s1050_s0 + $0x18] sm:$0xff] }
   0x6   :  { %556 = vmatmul.msk.f32.vlgmr.msra.gmra.mxu3 %vm120_vm0, %v31_v6  ;;  %131 = vmatpush.msra.mxu0 %v547_v7  ;;  %v57_v15 = vld [vmem:[%s1050_s0 + $0x8] sm:$0xfe]  ;;  %v81_v18 = vrot.slane %v741_v14, 1  ;;  %v575_v19 = vld [vmem:[%s1052_s2 + $0x198] sm:$0xff]  ;;  %v574_v21 = vld [vmem:[%s1052_s2 + $0x190] sm:$0xff] }
   0x7   :  { %199 = vmatpush.msra.mxu2 %v51_v8  ;;  %366 = vmatpush.msrb.mxu3 %v577_v9  ;;  %v545_v16 = vld [vmem:[%s1052_s2 + $0xe8] sm:$0xff]  ;;  %v80_v17 = vrot.slane %v57_v15, 1  ;;  %v49_v20 = vld [vmem:[%s1052_s2 + $0x58] sm:$0xff]  ;;  %v544_v23 = vld [vmem:[%s1052_s2 + $0xe0] sm:$0xff] }
   0x8   :  { %132 = vmatpush.msra.mxu0 %v546_v11  ;;  %173 = vmatpush.msra.mxu1 %v550_v12  ;;  %v48_v24 = vld [vmem:[%s1052_s2 + $0x50] sm:$0xff]  ;;  %v573_v25 = vld [vmem:[%s1052_s2 + $0x188] sm:$0xff]  ;;  %v543_v26 = vld [vmem:[%s1052_s2 + $0xd8] sm:$0xff] }
   0x9   :  { %200 = vmatpush.msra.mxu2 %v50_v13  ;;  %v82_v22 = vsel %vm76_vm1, %v80_v17, %v81_v18  ;;  %v59_v27 = vld [vmem:[%s1050_s0 + $0x28] sm:$0x1]  ;;  %v572_v29 = vld [vmem:[%s1052_s2 + $0x180] sm:$0xff]  ;;  %v542_v31 = vld [vmem:[%s1052_s2 + $0xd0] sm:$0xff] }
   0xa   :  { %323 = vmatpush.msrb.mxu1 %v575_v19  ;;  %133 = vmatpush.msra.mxu0 %v545_v16  ;;  %v47_v28 = vld [vmem:[%s1052_s2 + $0x48] sm:$0xff]  ;;  %v85_v30 = vrot.slane %v59_v27, 1  ;;  %v576_v32 = vld [vmem:[%s1052_s2 + $0x1a0] sm:$0xff]  ;;  %v571_v34 = vld [vmem:[%s1052_s2 + $0x178] sm:$0xff] }
   0xb   :  { %552 = vmatmul.msk.f32.vlgmr.msra.gmra.mxu1 %vm120_vm0, %v82_v22  ;;  %201 = vmatpush.msra.mxu2 %v49_v20  ;;  %v46_v33 = vld [vmem:[%s1052_s2 + $0x40] sm:$0xff]  ;;  %v541_v35 = vld [vmem:[%s1052_s2 + $0xc8] sm:$0xff]  ;;  %v45_v36 = vld [vmem:[%s1052_s2 + $0x38] sm:$0xff] }
   0xc   :  { %324 = vmatpush.msrb.mxu1 %v574_v21  ;;  %134 = vmatpush.msra.mxu0 %v544_v23  ;;  %v86_v37 = vsel %vm76_vm1, %v81_v18, %v85_v30  ;;  %v570_v38 = vld [vmem:[%s1052_s2 + $0x170] sm:$0xff]  ;;  %v809_v39 = vld [vmem:[%s1050_s0 + $0x48] sm:$0xff]  ;;  %v61_v40 = vld [vmem:[%s1050_s0 + $0x38] sm:$0xfe] }
   0xd   :  { %202 = vmatpush.msra.mxu2 %v48_v24  ;;  %367 = vmatpush.msrb.mxu3 %v576_v32  ;;  %v540_v41 = vld [vmem:[%s1052_s2 + $0xc0] sm:$0xff]  ;;  %v44_v42 = vld [vmem:[%s1052_s2 + $0x30] sm:$0xff]  ;;  %v569_v43 = vld [vmem:[%s1052_s2 + $0x168] sm:$0xff]  ;;  %v90_v46 = vrot.slane %v61_v40, 1  ;;  %v91_v47 = vrot.slane %v809_v39, 1 }
   0xe   :  { %325 = vmatpush.msrb.mxu1 %v573_v25  ;;  %557 = vmatmul.msk.f32.gmra.mxu3 %vm120_vm0, %v741_v14  ;;  %v35_v44 = vld [vmem:[%s1050_s0 + $0x38] sm:$0xff]  ;;  %v43_v48 = vld [vmem:[%s1052_s2 + $0x28] sm:$0xff]  ;;  %v568_v49 = vld [vmem:[%s1052_s2 + $0x160] sm:$0xff] }
   0xf   :  { %135 = vmatpush.msra.mxu0 %v543_v26  ;;  %203 = vmatpush.msra.mxu2 %v47_v28  ;;  %v539_v45 = vld [vmem:[%s1052_s2 + $0xb8] sm:$0xff]  ;;  %v538_v50 = vld [vmem:[%s1052_s2 + $0xb0] sm:$0xff]  ;;  %v42_v51 = vld [vmem:[%s1052_s2 + $0x20] sm:$0xff]  ;;  %v92_v54 = vsel %vm76_vm1, %v90_v46, %v91_v47 }
  0x10   :  { %326 = vmatpush.msrb.mxu1 %v572_v29  ;;  %v567_v52 = vld [vmem:[%s1052_s2 + $0x158] sm:$0xff]  ;;  %v537_v53 = vld [vmem:[%s1052_s2 + $0xa8] sm:$0xff]  ;;  %v854_v55 = vld [vmem:[%s1050_s0 + $0x10] sm:$0xff] }
  0x11   :  { %136 = vmatpush.msra.mxu0 %v542_v31  ;;  %204 = vmatpush.msra.mxu2 %v46_v33  ;;  %v56_v56 = vld [vmem:[%s1050_s0] sm:$0xfe]  ;;  %v41_v57 = vld [vmem:[%s1052_s2 + $0x18] sm:$0xff]  ;;  %v566_v58 = vld [vmem:[%s1052_s2 + $0x150] sm:$0xff]  ;;  %v78_v0 = vrot.slane %v854_v55, 1 }
  0x12   :  { %327 = vmatpush.msrb.mxu1 %v571_v34  ;;  %v63_v59 = vld [vmem:[%s1050_s0 + $0x58] sm:$0x1]  ;;  %v536_v60 = vld [vmem:[%s1052_s2 + $0xa0] sm:$0xff]  ;;  %v40_v61 = vld [vmem:[%s1052_s2 + $0x10] sm:$0xff]  ;;  %v77_v63 = vrot.slane %v56_v56, 1 }
  0x13   :  { %137 = vmatpush.msra.mxu0 %v541_v35  ;;  %553 = vmatmul.msk.f32.gmra.mxu1 %vm120_vm0, %v86_v37  ;;  %v565_v62 = vld [vmem:[%s1052_s2 + $0x148] sm:$0xff]  ;;  %v535_v1 = vld [vmem:[%s1052_s2 + $0x98] sm:$0xff]  ;;  %v564_v3 = vld [vmem:[%s1052_s2 + $0x140] sm:$0xff]  ;;  %v95_v4 = vrot.slane %v63_v59, 1 }
  0x14   :  { %205 = vmatpush.msra.mxu2 %v45_v36  ;;  %328 = vmatpush.msrb.mxu1 %v570_v38  ;;  %v39_v2 = vld [vmem:[%s1052_s2 + $0x8] sm:$0xff]  ;;  %v534_v6 = vld [vmem:[%s1052_s2 + $0x90] sm:$0xff] }
  0x15   :  { %138 = vmatpush.msra.mxu0 %v540_v41  ;;  %v256_v5 = vld [vmem:[%s1050_s0 + $0x8] sm:$0xfc] }
  0x16   :  { %206 = vmatpush.msra.mxu2 %v44_v42  ;;  %329 = vmatpush.msrb.mxu1 %v569_v43 }
  0x17   :  { %558 = vmatmul.msk.f32.gmra.mxu3 %vm120_vm0, %v35_v44  ;;  %139 = vmatpush.msra.mxu0 %v539_v45 }
  0x18   :  { %207 = vmatpush.msra.mxu2 %v43_v48  ;;  %330 = vmatpush.msrb.mxu1 %v568_v49 }
  0x19   :  { %140 = vmatpush.msra.mxu0 %v538_v50 }
  0x1a   :  { %208 = vmatpush.msra.mxu2 %v42_v51  ;;  %331 = vmatpush.msrb.mxu1 %v567_v52 }
  0x1b   :  { %141 = vmatpush.msra.mxu0 %v537_v53  ;;  %554 = vmatmul.msk.f32.gmra.mxu1 %vm120_vm0, %v92_v54 }
  0x1c   :  { %209 = vmatpush.msra.mxu2 %v41_v57  ;;  %332 = vmatpush.msrb.mxu1 %v566_v58 }
  0x1d   :  { %142 = vmatpush.msra.mxu0 %v536_v60 }
  0x1e   :  { %210 = vmatpush.msra.mxu2 %v40_v61  ;;  %333 = vmatpush.msrb.mxu1 %v565_v62 }
  0x1f   :  { %13 = vsyncpa [#allocation3], 0  ;;  %559 = vmatmul.msk.f32.gmra.mxu3 %vm120_vm0, %v809_v39  ;;  %143 = vmatpush.msra.mxu0 %v535_v1  ;;  %v38_v7 = vld [vmem:[%s1052_s2] sm:$0xff]  ;;  %v79_v8 = vsel %vm76_vm1, %v77_v63, %v78_v0  ;;  %v96_v10 = vsel %vm76_vm1, %v91_v47, %v95_v4  ;;  %v275_v11 = vrot.slane %v256_v5, 2  ;;  %v276_v12 = vrot.slane %v741_v14, 2  ;;  %v563_v15 = vld [vmem:[%s1052_s2 + $0x138] sm:$0xff] }
  0x20   :  { %211 = vmatpush.msra.mxu2 %v39_v2  ;;  %v30_v9 = vld [vmem:[%s1050_s0] sm:$0xff]  ;;  %334 = vmatpush.msrb.mxu1 %v564_v3  ;;  %vm271_vm2 = vcmask 1045504   ;;  %v562_v14 = vld [vmem:[%s1052_s2 + $0x130] sm:$0xff]  ;;  %v273_v20 = vrot.slane %v854_v55, 2  ;;  %v561_v21 = vld [vmem:[%s1052_s2 + $0x128] sm:$0xff]  ;;  %v286_v40 = vrot.slane %v809_v39, 2 }
  0x21   :  { %v58_v13 = vld [vmem:[%s1050_s0 + $0x20] sm:$0x1]  ;;  %144 = vmatpush.msra.mxu0 %v534_v6  ;;  %v255_v16 = vld [vmem:[%s1050_s0] sm:$0xfc]  ;;  %v277_v18 = vsel %vm271_vm2, %v275_v11, %v276_v12  ;;  %v258_v22 = vld [vmem:[%s1050_s0 + $0x28] sm:$0x3] }
  0x22   :  { %212 = vmatpush.msra.mxu2 %v38_v7  ;;  %145 = vmatmul.f32.vlgmr.msra.gmra.mxu0 %v79_v8  ;;  %v83_v17 = vrot.slane %v58_v13, 1  ;;  %v272_v19 = vrot.slane %v255_v16, 2  ;;  %v560_v24 = vld [vmem:[%s1052_s2 + $0x120] sm:$0xff]  ;;  %v280_v26 = vrot.slane %v258_v22, 2  ;;  %v60_v28 = vld [vmem:[%s1050_s0 + $0x30] sm:$0xfe] }
  0x23   :  { %213 = vmatmul.f32.vlgmr.msra.gmra.mxu2 %v30_v9  ;;  %555 = vmatmul.msk.f32.gmra.mxu1 %vm120_vm0, %v96_v10  ;;  %v36_v27 = vld [vmem:[%s1050_s0 + $0x40] sm:$0xff]  ;;  %v87_v30 = vrot.slane %v60_v28, 1  ;;  %v260_v34 = vld [vmem:[%s1050_s0 + $0x38] sm:$0xfc]  ;;  %v34_v36 = vld [vmem:[%s1050_s0 + $0x30] sm:$0xff]  ;;  %vm451_vm3 = vcmask 261120  }
  0x24   :  { %335 = vmatpush.msrb.mxu1 %v563_v15  ;;  %v84_v23 = vsel %vm76_vm1, %v78_v0, %v83_v17  ;;  %v274_v25 = vsel %vm271_vm2, %v272_v19, %v273_v20  ;;  %v257_v29 = vld [vmem:[%s1050_s0 + $0x20] sm:$0x3]  ;;  %v88_v31 = vrot.slane %v36_v27, 1  ;;  %v281_v32 = vsel %vm271_vm2, %v276_v12, %v280_v26  ;;  %v62_v41 = vld [vmem:[%s1050_s0 + $0x50] sm:$0x1]  ;;  %v420_v54 = vld [vmem:[%s1054_s4 + $0x78] sm:$0xff] }
  0x25   :  { %v278_v33 = vrot.slane %v257_v29, 2  ;;  %v285_v38 = vrot.slane %v260_v34, 2  ;;  %v259_v42 = vld [vmem:[%s1050_s0 + $0x30] sm:$0xfc]  ;;  %v93_v43 = vrot.slane %v62_v41, 1  ;;  %v283_v46 = vrot.slane %v36_v27, 2  ;;  %421 = vmatpush.msrb.mxu0 %v420_v54  ;;  %584 = vmatpush.msrb.mxu2 %v420_v54 }
  0x26   :  { %336 = vmatpush.msrb.mxu1 %v562_v14  ;;  %v89_v35 = vsel %vm76_vm1, %v87_v30, %v88_v31  ;;  %v282_v45 = vrot.slane %v259_v42, 2  ;;  %v262_v39 = vld [vmem:[%s1050_s0 + $0x58] sm:$0x3]  ;;  %v261_v50 = vld [vmem:[%s1050_s0 + $0x50] sm:$0x3]  ;;  %585 = vmatpush.msra.mxu3 %v420_v54  ;;  %v418_v56 = vld [vmem:[%s1054_s4 + $0x68] sm:$0xff] }
  0x27   :  { %578 = vmatmul.msk.f32.vlgmr.msrb.gmra.mxu3 %vm120_vm0, %v277_v18  ;;  %v279_v37 = vsel %vm271_vm2, %v273_v20, %v278_v33  ;;  %v287_v44 = vsel %vm271_vm2, %v285_v38, %v286_v40  ;;  %v94_v47 = vsel %vm76_vm1, %v88_v31, %v93_v43  ;;  %v290_v49 = vrot.slane %v262_v39, 2  ;;  %v417_v57 = vld [vmem:[%s1054_s4 + $0x60] sm:$0xff]  ;;  %v416_v58 = vld [vmem:[%s1054_s4 + $0x58] sm:$0xff]  ;;  %v415_v59 = vld [vmem:[%s1054_s4 + $0x50] sm:$0xff]  ;;  %s525_s26 = sshll.u32 %s1058_s8, 4  ;;  %s526_s26 = int_to_ptr.hbm [resolvable:$true] %s525_s26 }
  0x28   :  { %337 = vmatpush.msrb.mxu1 %v561_v21  ;;  %v284_v48 = vsel %vm271_vm2, %v282_v45, %v283_v46  ;;  %v288_v52 = vrot.slane %v261_v50, 2  ;;  %v414_v60 = vld [vmem:[%s1054_s4 + $0x48] sm:$0xff]  ;;  %v413_v61 = vld [vmem:[%s1054_s4 + $0x40] sm:$0xff]  ;;  %v412_v62 = vld [vmem:[%s1054_s4 + $0x38] sm:$0xff]  ;;  %vm480_vm4 = vcmask 64512   ;;  %vm504_vm5 = vcmask 74752  }
  0x29   :  { %v291_v51 = vsel %vm271_vm2, %v286_v40, %v290_v49  ;;  %v411_v63 = vld [vmem:[%s1054_s4 + $0x30] sm:$0xff]  ;;  %v410_v1 = vld [vmem:[%s1054_s4 + $0x28] sm:$0xff]  ;;  %v409_v3 = vld [vmem:[%s1054_s4 + $0x20] sm:$0xff] }
  0x2a   :  { %148 = vmatmul.f32.gmra.mxu0 %v84_v23  ;;  %338 = vmatpush.msrb.mxu1 %v560_v24  ;;  %v289_v53 = vsel %vm271_vm2, %v283_v46, %v288_v52  ;;  %v408_v4 = vld [vmem:[%s1054_s4 + $0x18] sm:$0xff]  ;;  %v407_v5 = vld [vmem:[%s1054_s4 + $0x10] sm:$0xff]  ;;  %v406_v7 = vld [vmem:[%s1054_s4 + $0x8] sm:$0xff] }
  0x2b   :  { %216 = vmatmul.f32.gmra.mxu2 %v854_v55  ;;  %339 = vmatmul.f32.vlgmr.msrb.gmra.mxu1 %v274_v25  ;;  %v419_v55 = vld [vmem:[%s1054_s4 + $0x70] sm:$0xff]  ;;  %v405_v9 = vld [vmem:[%s1054_s4] sm:$0xff]  ;;  %v394_v41 = vld [vmem:[%s1051_s1 + $0x8] sm:$0xff] }
  0x2c   :  { %422 = vmatpush.msrb.mxu0 %v419_v55  ;;  %586 = vmatpush.msrb.mxu2 %v419_v55  ;;  %v617_v23 = vld [vmem:[%s1053_s3] ss:$0 sm:$0xff] }
  0x2d   :  { %587 = vmatpush.msra.mxu3 %v419_v55 }
  0x2e   :  { %423 = vmatpush.msrb.mxu0 %v418_v56  ;;  %588 = vmatpush.msrb.mxu2 %v418_v56 }
  0x2f   :  { %579 = vmatmul.msk.f32.gmra.mxu3 %vm120_vm0, %v281_v32 }
  0x30   :  { %589 = vmatpush.msra.mxu3 %v418_v56  ;;  %424 = vmatpush.msrb.mxu0 %v417_v57 }
  0x31   :  { %590 = vmatpush.msrb.mxu2 %v417_v57 }
  0x32   :  { %151 = vmatmul.f32.gmra.mxu0 %v89_v35  ;;  %591 = vmatpush.msra.mxu3 %v417_v57 }
  0x33   :  { %219 = vmatmul.f32.gmra.mxu2 %v34_v36  ;;  %342 = vmatmul.f32.gmra.mxu1 %v279_v37 }
  0x34   :  { %425 = vmatpush.msrb.mxu0 %v416_v58  ;;  %592 = vmatpush.msrb.mxu2 %v416_v58 }
  0x35   :  { %593 = vmatpush.msra.mxu3 %v416_v58 }
  0x36   :  { %426 = vmatpush.msrb.mxu0 %v415_v59  ;;  %594 = vmatpush.msrb.mxu2 %v415_v59 }
  0x37   :  { %580 = vmatmul.msk.f32.gmra.mxu3 %vm120_vm0, %v287_v44 }
  0x38   :  { %595 = vmatpush.msra.mxu3 %v415_v59  ;;  %427 = vmatpush.msrb.mxu0 %v414_v60 }
  0x39   :  { %596 = vmatpush.msrb.mxu2 %v414_v60 }
  0x3a   :  { %154 = vmatmul.f32.gmra.mxu0 %v94_v47  ;;  %597 = vmatpush.msra.mxu3 %v414_v60 }
  0x3b   :  { %222 = vmatmul.f32.gmra.mxu2 %v36_v27  ;;  %345 = vmatmul.f32.gmra.mxu1 %v284_v48  ;;  %v393_v27 = vld [vmem:[%s1051_s1] sm:$0xff] }
  0x3c   :  { %428 = vmatpush.msrb.mxu0 %v413_v61  ;;  %598 = vmatpush.msrb.mxu2 %v413_v61 }
  0x3d   :  { %599 = vmatpush.msra.mxu3 %v413_v61 }
  0x3e   :  { %429 = vmatpush.msrb.mxu0 %v412_v62  ;;  %600 = vmatpush.msrb.mxu2 %v412_v62 }
  0x3f   :  { %581 = vmatmul.msk.f32.gmra.mxu3 %vm120_vm0, %v291_v51 }
  0x40   :  { %601 = vmatpush.msra.mxu3 %v412_v62  ;;  %430 = vmatpush.msrb.mxu0 %v411_v63 }
  0x41   :  { %602 = vmatpush.msrb.mxu2 %v411_v63 }
  0x42   :  { %603 = vmatpush.msra.mxu3 %v411_v63  ;;  %431 = vmatpush.msrb.mxu0 %v410_v1  ;;  %v396_v63 = vld [vmem:[%s1051_s1 + $0x18] sm:$0xff] }
  0x43   :  { %348 = vmatmul.f32.gmra.mxu1 %v289_v53  ;;  %604 = vmatpush.msrb.mxu2 %v410_v1  ;;  %v395_v53 = vld [vmem:[%s1051_s1 + $0x10] sm:$0xff] }
  0x44   :  { %605 = vmatpush.msra.mxu3 %v410_v1  ;;  %432 = vmatpush.msrb.mxu0 %v409_v3 }
  0x45   :  { %606 = vmatpush.msrb.mxu2 %v409_v3 }
  0x46   :  { %607 = vmatpush.msra.mxu3 %v409_v3  ;;  %433 = vmatpush.msrb.mxu0 %v408_v4  ;;  %v475_v3 = vld [vmem:[%s1056_s6] sm:$0xff] }
  0x47   :  { %608 = vmatpush.msrb.mxu2 %v408_v4  ;;  %499 = vmatpush.msra.mxu1 %v475_v3 }
  0x48   :  { %609 = vmatpush.msra.mxu3 %v408_v4  ;;  %434 = vmatpush.msrb.mxu0 %v407_v5 }
  0x49   :  { %610 = vmatpush.msrb.mxu2 %v407_v5 }
  0x4a   :  { %611 = vmatpush.msra.mxu3 %v407_v5  ;;  %435 = vmatpush.msrb.mxu0 %v406_v7 }
  0x4b   :  { %612 = vmatpush.msrb.mxu2 %v406_v7 }
  0x4c   :  { %613 = vmatpush.msra.mxu3 %v406_v7  ;;  %436 = vmatpush.msrb.mxu0 %v405_v9 }
  0x4d   :  { %614 = vmatpush.msrb.mxu2 %v405_v9 }
  0x4e   :  { %615 = vmatpush.msra.mxu3 %v405_v9 }
  0x88   :  { %v175_v0 = vpop.f32.mrf.mxu1 }
  0x89   :  { %v243_v2 = vpop.f32.mrf.mxu3 }
  0x90   :  { %v178_v6 = vpop.f32.mrf.mxu1 }
  0x91   :  { %v246_v8 = vpop.f32.mrf.mxu3 }
  0x98   :  { %v181_v10 = vpop.f32.mrf.mxu1 }
  0x9a   :  { %v249_v11 = vpop.f32.mrf.mxu3 }
  0x9f   :  { %v146_v12 = vpop.f32.mrf.mxu0 }
  0xa0   :  { %v184_v13 = vpop.f32.mrf.mxu1  ;;  %v176_v16 = vadd.f32 %v175_v0, %v146_v12 }
  0xa2   :  { %v252_v15 = vpop.f32.mrf.mxu3 }
  0xa6   :  { %v214_v14 = vpop.f32.mrf.mxu2 }
  0xa7   :  { %v215_v17 = vadd.f32 %v214_v14, %v176_v16  ;;  %v149_v18 = vpop.f32.mrf.mxu0 }
  0xa8   :  { %v340_v19 = vpop.f32.mrf.mxu1  ;;  %v179_v24 = vadd.f32 %v178_v6, %v149_v18 }
  0xa9   :  { %v244_v21 = vadd.f32 %v243_v2, %v215_v17 }
  0xaa   :  { %v369_v20 = vpop.f32.mrf.mxu3 }
  0xab   :  { %v370_v22 = vadd.f32 %v369_v20, %v340_v19 }
  0xad   :  { %v381_v25 = vadd.f32 %v370_v22, %v244_v21 }
  0xae   :  { %v217_v26 = vpop.f32.mrf.mxu2 }
  0xaf   :  { %v389_v28 = vadd.f32 %v617_v23, %v381_v25  ;;  %v218_v29 = vadd.f32 %v217_v26, %v179_v24  ;;  %v152_v30 = vpop.f32.mrf.mxu0 }
  0xb0   :  { %v343_v31 = vpop.f32.mrf.mxu1  ;;  %v182_v37 = vadd.f32 %v181_v10, %v152_v30  ;;  %v618_v10 = vld [vmem:[%s1057_s7] ss:$0 sm:$0xff] }
  0xb1   :  { %v397_v32 = vadd.f32 %v393_v27, %v389_v28  ;;  %v247_v34 = vadd.f32 %v246_v8, %v218_v29  ;;  %v450_v8 = vld [vmem:[%s1055_s5] sm:$0x3]  ;;  %s649_s5 = smov [#allocation2]  }
  0xb2   :  { %v372_v33 = vpop.f32.mrf.mxu3  ;;  %s523_s24 = sshll.u32 %s649_s5, 4  ;;  %s524_s24 = int_to_ptr.vmem [resolvable:$true] %s523_s24 }
  0xb3   :  { %v373_v35 = vadd.f32 %v372_v33, %v343_v31  ;;  %v401_v36 = vmax.f32 %v397_v32, 0.0 }
  0xb5   :  { %v382_v38 = vadd.f32 %v373_v35, %v247_v34  ;;  %437 = vmatmul.f32.vlgmr.msrb.gmra.mxu0 %v401_v36 }
  0xb6   :  { %v220_v40 = vpop.f32.mrf.mxu2 }
  0xb7   :  { %v221_v42 = vadd.f32 %v220_v40, %v182_v37  ;;  %v390_v43 = vadd.f32 %v617_v23, %v382_v38  ;;  %v155_v46 = vpop.f32.mrf.mxu0 }
  0xb8   :  { %v346_v44 = vpop.f32.mrf.mxu1  ;;  %v185_v50 = vadd.f32 %v184_v13, %v155_v46 }
  0xb9   :  { %v398_v45 = vadd.f32 %v394_v41, %v390_v43  ;;  %v250_v47 = vadd.f32 %v249_v11, %v221_v42 }
  0xba   :  { %v375_v39 = vpop.f32.mrf.mxu3 }
  0xbb   :  { %v376_v48 = vadd.f32 %v375_v39, %v346_v44  ;;  %v402_v49 = vmax.f32 %v398_v45, 0.0 }
  0xbd   :  { %v383_v51 = vadd.f32 %v376_v48, %v250_v47  ;;  %440 = vmatmul.f32.gmra.mxu0 %v402_v49 }
  0xbe   :  { %v223_v52 = vpop.f32.mrf.mxu2 }
  0xbf   :  { %v391_v54 = vadd.f32 %v617_v23, %v383_v51  ;;  %v224_v55 = vadd.f32 %v223_v52, %v185_v50 }
  0xc0   :  { %v349_v56 = vpop.f32.mrf.mxu1 }
  0xc1   :  { %v399_v57 = vadd.f32 %v395_v53, %v391_v54  ;;  %v253_v59 = vadd.f32 %v252_v15, %v224_v55 }
  0xc2   :  { %v378_v58 = vpop.f32.mrf.mxu3 }
  0xc3   :  { %v379_v60 = vadd.f32 %v378_v58, %v349_v56  ;;  %v403_v61 = vmax.f32 %v399_v57, 0.0 }
  0xc5   :  { %v384_v62 = vadd.f32 %v379_v60, %v253_v59  ;;  %443 = vmatmul.f32.vlgmr.msrb.gmra.mxu2 %v403_v61 }
  0xc7   :  { %v392_v0 = vadd.f32 %v617_v23, %v384_v62 }
  0xc9   :  { %v400_v1 = vadd.f32 %v396_v63, %v392_v0 }
  0xcb   :  { %v404_v2 = vmax.f32 %v400_v1, 0.0 }
  0xcd   :  { %446 = vmatmul.f32.vlgmr.msra.gmra.mxu3 %v404_v2 }
 0x132   :  { %v438_v4 = vpop.f32.mrf.mxu0 }
 0x13a   :  { %v441_v7 = vpop.f32.mrf.mxu0 }
 0x148   :  { %v444_v6 = vpop.f32.mrf.mxu2 }
 0x150   :  { %v447_v5 = vpop.f32.mrf.mxu3 }
 0x151   :  { %467 = vmatpush.msra.mxu2 %v447_v5 }
 0x153   :  { %468 = vmatpush.msra.mxu2 %v444_v6 }
 0x155   :  { %469 = vmatpush.msra.mxu2 %v441_v7 }
 0x157   :  { %470 = vmatpush.msra.mxu2 %v438_v4 }
 0x158   :  { %582 = vmatmul.msk.f32.vlgmr.msra.gmra.mxu2 %vm451_vm3, %v450_v8 }
 0x1db   :  { %v472_v9 = vpop.f32.mrf.mxu2 }
 0x1dc   :  { %583 = vmatmul.msk.f32.vlgmr.msra.gmra.mxu1 %vm480_vm4, %v472_v9 }
 0x259   :  { %v501_v11 = vpop.f32.mrf.mxu1 }
 0x25a   :  { %v502_v12 = vadd.f32 %v618_v10, %v501_v11 }
 0x25c   :  { %v505_v13 = vsel %vm504_vm5, %v502_v12, -inf }
 0x25d   :  { %506 = vmax.xlane.f32.xlu0 %v505_v13 }
 0x2d0   :  { %v507_v15 = vpop.xlane.xlu0 %506 }
 0x2d1   :  { %v508_v16 = vsub.f32 %v502_v12, %v507_v15 }
 0x2d3   :  { %v509_v14 = vmul.f32 1.442695, %v508_v16 }
 0x2d5   :  { %619 = vpow2.f32 %v509_v14 }
 0x2db   :  { %v620_v17 = vpop.eup %619 }
 0x2dc   :  { %v511_v18 = vsel %vm504_vm5, %v620_v17, 0.0 }
 0x2dd   :  { %512 = vadd.xlane.f32.xlu0 %v511_v18 }
 0x350   :  { %v513_v19 = vpop.xlane.xlu0 %512 }
 0x351   :  { %621 = vlog2.f32 %v513_v19 }
 0x357   :  { %v622_v20 = vpop.eup %621 }
 0x358   :  { %v515_v21 = vmul.f32 0.6931472, %v622_v20 }
 0x35a   :  { %v516_v22 = vsub.f32 %v508_v16, %v515_v21 }
 0x35c   :  { %517 = vst.msk [vmem:[#allocation2] sm:$0x3] %vm504_vm5, %v516_v22 }
 0x35d   :  { %528 = dma.vmem_to_hbm [thread:$0]  %s524_s24, 32, %s526_s26, [#allocation3]  }
 0x35e   :  { %647 = dma.done.wait [#allocation3], 32  }
 0x35f   :  { %648 = vsyncadd [#allocation3], 4294967264 }
 0x360   :  { %533 = vsyncpa [#allocation3], 1 }

</bundles_post_ra>
